<compile_context>
chip_gen: v6e
topology: v6e:2x2x1
jax: 0.10.0
libtpu: 0.0.40
codegen_flags: <defaults>
</compile_context>

<pallas_src>
import functools
import math

import jax
import jax.numpy as jnp
from jax.experimental import pallas as pl
from jax.experimental.pallas import tpu as pltpu

_LANES = 128
# ~2 MiB per stream per grid step -> 3 streams x 2 pipeline buffers = 12 MiB
# VMEM; fits every generation's scoped default without compiler-param changes.
_TARGET_BLOCK_BYTES = 2 * 1024 * 1024


def _on_tpu():
    try:
        return jax.default_backend() == "tpu"
    except Exception:  # pragma: no cover - defensive
        return False


def _bits_to_uniform(bits):
    """Raw PRNG bits -> Uniform[0,1) float32 via the mantissa trick."""
    u32 = pltpu.bitcast(bits, jnp.uint32)
    mant = (u32 >> jnp.uint32(9)) | jnp.uint32(0x3F800000)  # float in [1, 2)
    return pltpu.bitcast(mant, jnp.float32) - 1.0


def _softplus(x, beta, threshold):
    # torch.nn.Softplus: linear above threshold for numerical stability.
    bx = beta * x
    return jnp.where(bx > threshold, x, jnp.log1p(jnp.exp(bx)) / beta)


# ---------------- TPU kernels: on-chip PRNG (no extra HBM noise stream) -------

def _eps_kernel_tpu(seed_ref, mu_ref, lv_ref, out_ref):
    # Fold the grid index in as a second seed word -> independent stream per block.
    pltpu.prng_seed(seed_ref[0], pl.program_id(0))
    eps = _bits_to_uniform(pltpu.prng_random_bits(mu_ref.shape))
    std = jnp.exp(0.5 * lv_ref[...].astype(jnp.float32))
    out_ref[...] = (mu_ref[...].astype(jnp.float32) + eps * std).astype(out_ref.dtype)


def _softplus_kernel_tpu(seed_ref, mu_ref, lv_ref, out_ref, *, beta, threshold):
    # TODO(synk): on v7x only, profile whether the EUP (exp/log1p + normal draw)
    # becomes the critical unit; if so, compute the softplus chain in bf16 there.
    pltpu.prng_seed(seed_ref[0], pl.program_id(0))
    n = pltpu.stateful_normal(mu_ref.shape, jnp.float32)
    std = _softplus(lv_ref[...].astype(jnp.float32), beta, threshold)
    out_ref[...] = (mu_ref[...].astype(jnp.float32) + n * std).astype(out_ref.dtype)


# ------------- Portable kernels (CPU / interpret): noise streamed from HBM ----

def _eps_kernel_noise(mu_ref, lv_ref, eps_ref, out_ref):
    std = jnp.exp(0.5 * lv_ref[...].astype(jnp.float32))
    out_ref[...] = (mu_ref[...].astype(jnp.float32)
                    + eps_ref[...] * std).astype(out_ref.dtype)


def _softplus_kernel_noise(mu_ref, lv_ref, n_ref, out_ref, *, beta, threshold):
    std = _softplus(lv_ref[...].astype(jnp.float32), beta, threshold)
    out_ref[...] = (mu_ref[...].astype(jnp.float32)
                    + n_ref[...] * std).astype(out_ref.dtype)


@functools.partial(jax.jit,
                   static_argnames=("mode", "beta", "threshold", "use_tpu_prng"))
def _normal_prior(mu, logvar, seed_arr, *, mode, beta, threshold, use_tpu_prng):
    orig_shape = mu.shape
    out_dtype = mu.dtype
    n = int(math.prod(orig_shape)) if orig_shape else 1

    mu_f = jnp.reshape(mu, (-1,))
    lv_f = jnp.reshape(logvar, (-1,))

    # Lane-pad only when the flat size is not a multiple of 128.  For aligned
    # sizes the (rows, 128) view below is pure metadata -> no extra HBM pass
    # (previous revision padded to 32*128 and always paid pad + slice).
    # Ragged row counts vs. the block are handled by Pallas with a masked
    # partial final block, not by physical padding.
    # TODO(synk): for flat sizes that are not a multiple of 128 the tiny pad
    # and the final slice still cost one HBM pass each; an in-kernel masked
    # lane tail would remove those too.
    rem = n % _LANES
    padded = rem != 0
    if padded:
        mu_f = jnp.pad(mu_f, (0, _LANES - rem))
        lv_f = jnp.pad(lv_f, (0, _LANES - rem))
    rows = (n + _LANES - 1) // _LANES

    mu2 = mu_f.reshape(rows, _LANES)
    lv2 = lv_f.reshape(rows, _LANES)

    itemsize = jnp.dtype(out_dtype).itemsize
    max_block_rows = max(8, (_TARGET_BLOCK_BYTES // (_LANES * itemsize)) // 8 * 8)
    if rows <= max_block_rows:
        block_rows = rows             # single full-extent block (any row count OK)
    else:
        block_rows = max_block_rows   # multiple of 8; last block may be partial
    grid = (pl.cdiv(rows, block_rows),)
    blk = (block_rows, _LANES)
    out_shape = jax.ShapeDtypeStruct((rows, _LANES), out_dtype)

    n_slab = rows * _LANES
    if mode == "softplus":
        transcendentals, flops = 3 * n_slab, 6 * n_slab
    else:
        transcendentals, flops = n_slab, 3 * n_slab
    io_bytes = 3 * n_slab * itemsize + (0 if use_tpu_prng else 4 * n_slab)
    cost = pl.CostEstimate(flops=flops, transcendentals=transcendentals,
                           bytes_accessed=io_bytes)
    # "parallel" lets Mosaic shard the grid axis across both TensorCores on
    # multi-core chips (v7x); it is a no-op on the single-TC v5e/v6e.
    cparams = pltpu.CompilerParams(dimension_semantics=("parallel",))

    if use_tpu_prng:
        if mode == "softplus":
            kernel = functools.partial(_softplus_kernel_tpu,
                                       beta=beta, threshold=threshold)
        else:
            kernel = _eps_kernel_tpu
        out2 = pl.pallas_call(
            kernel,
            out_shape=out_shape,
            grid_spec=pltpu.PrefetchScalarGridSpec(
                num_scalar_prefetch=1,
                grid=grid,
                in_specs=[pl.BlockSpec(blk, lambda i, s: (i, 0)),
                          pl.BlockSpec(blk, lambda i, s: (i, 0))],
                out_specs=pl.BlockSpec(blk, lambda i, s: (i, 0)),
            ),
            compiler_params=cparams,
            cost_estimate=cost,
        )(seed_arr, mu2, lv2)
    else:
        # Interpret / non-TPU fallback: pltpu PRNG primitives have no CPU
        # lowering, so draw the noise with jax.random and stream it in.
        key = jax.random.PRNGKey(seed_arr[0])
        if mode == "softplus":
            noise = jax.random.normal(key, (rows, _LANES), dtype=jnp.float32)
            kernel = functools.partial(_softplus_kernel_noise,
                                       beta=beta, threshold=threshold)
        else:
            noise = jax.random.uniform(key, (rows, _LANES), dtype=jnp.float32)
            kernel = _eps_kernel_noise
        out2 = pl.pallas_call(
            kernel,
            out_shape=out_shape,
            grid_spec=pltpu.PrefetchScalarGridSpec(
                num_scalar_prefetch=0,
                grid=grid,
                in_specs=[pl.BlockSpec(blk, lambda i: (i, 0)),
                          pl.BlockSpec(blk, lambda i: (i, 0)),
                          pl.BlockSpec(blk, lambda i: (i, 0))],
                out_specs=pl.BlockSpec(blk, lambda i: (i, 0)),
            ),
            compiler_params=cparams,
            cost_estimate=cost,
        )(mu2, lv2, noise)

    out_flat = out2.reshape(-1)
    if padded:
        out_flat = out_flat[:n]
    return out_flat.reshape(orig_shape)


class NormalPrior:
    """JAX/Pallas port of moai NormalPrior. No learnable parameters."""

    def __init__(self, mode: str = "standard", beta: float = 1.0,
                 threshold: float = 20.0):
        assert beta >= 0.0 and threshold >= 0.0
        self.mode = mode
        self.beta = float(beta)
        self.threshold = float(threshold)

    def __call__(self, mu, logvar, seed: int = 0):
        assert mu.shape == logvar.shape
        seed_arr = jnp.asarray([seed], dtype=jnp.int32)
        return _normal_prior(mu, logvar, seed_arr,
                             mode=self.mode, beta=self.beta,
                             threshold=self.threshold,
                             use_tpu_prng=_on_tpu())


if __name__ == "__main__":
    key = jax.random.PRNGKey(0)
    k_mu, k_lv = jax.random.split(key)
    # NCHW, small shapes consistent with the module's VAE-style usage.
    B, C, H, W = 2, 4, 16, 16
    mu = jax.random.normal(k_mu, (B, C, H, W), dtype=jnp.float32)
    logvar = jax.random.normal(k_lv, (B, C, H, W), dtype=jnp.float32) * 0.1

    # default mode ('standard' -> prior_with_eps): mu + U[0,1) * exp(0.5*logvar)
    prior = NormalPrior(mode="standard")
    out = jax.block_until_ready(prior(mu, logvar, seed=42))
    assert out.shape == (B, C, H, W) and out.dtype == jnp.float32

    # sanity: (out - mu) / std must lie in ~[0, 1) elementwise for the eps mode
    std = jnp.exp(0.5 * logvar)
    eps = (out - mu) / std
    assert bool(jnp.all(jnp.isfinite(out)))
    assert bool(jnp.all(eps > -1e-4)) and bool(jnp.all(eps < 1.0 + 1e-4))

    # softplus / rsample mode
    prior_sp = NormalPrior(mode="softplus", beta=1.0, threshold=20.0)
    out_sp = jax.block_until_ready(prior_sp(mu, logvar, seed=7))
    assert out_sp.shape == (B, C, H, W)
    assert bool(jnp.all(jnp.isfinite(out_sp)))

    # non-128-aligned flat size exercises the lane-pad + slice fallback path
    mu_u = jax.random.normal(k_mu, (3, 7, 11), dtype=jnp.float32)
    lv_u = jax.random.normal(k_lv, (3, 7, 11), dtype=jnp.float32) * 0.1
    out_u = jax.block_until_ready(prior(mu_u, lv_u, seed=3))
    assert out_u.shape == (3, 7, 11)
    eps_u = (out_u - mu_u) / jnp.exp(0.5 * lv_u)
    assert bool(jnp.all(jnp.isfinite(out_u)))
    assert bool(jnp.all(eps_u > -1e-4)) and bool(jnp.all(eps_u < 1.0 + 1e-4))

    print("KERNEL_OK")
</pallas_src>

<mosaic_0001>
module attributes {stable_mosaic.version = 11 : i64} {
  func.func @_eps_kernel_noise(%arg0: i32, %arg1: memref<16x128xf32, #tpu.memory_space<vmem>>, %arg2: memref<16x128xf32, #tpu.memory_space<vmem>>, %arg3: memref<16x128xf32, #tpu.memory_space<vmem>>, %arg4: memref<16x128xf32, #tpu.memory_space<vmem>>) attributes {dimension_semantics = [#tpu.dimension_semantics<parallel>], iteration_bounds = array<i64: 1>, scalar_prefetch = 0 : i64, scratch_operands = 0 : i64, tpu.core_type = #tpu.core_type<tc>, window_params = [{transform_indices = @transform_0, window_bounds = array<i64: 16, 128>}, {transform_indices = @transform_1, window_bounds = array<i64: 16, 128>}, {transform_indices = @transform_2, window_bounds = array<i64: 16, 128>}, {transform_indices = @transform_3, window_bounds = array<i64: 16, 128>}]} {
    %c0 = arith.constant 0 : index
    %c0_0 = arith.constant 0 : index
    %0 = vector.load %arg2[%c0, %c0_0] : memref<16x128xf32, #tpu.memory_space<vmem>>, vector<16x128xf32>
    %cst = arith.constant 5.000000e-01 : f32
    %1 = vector.broadcast %cst : f32 to vector<16x128xf32>
    %2 = arith.mulf %1, %0 : vector<16x128xf32>
    %3 = math.exp %2 : vector<16x128xf32>
    %c0_1 = arith.constant 0 : index
    %c0_2 = arith.constant 0 : index
    %4 = vector.load %arg1[%c0_1, %c0_2] : memref<16x128xf32, #tpu.memory_space<vmem>>, vector<16x128xf32>
    %c0_3 = arith.constant 0 : index
    %c0_4 = arith.constant 0 : index
    %5 = vector.load %arg3[%c0_3, %c0_4] : memref<16x128xf32, #tpu.memory_space<vmem>>, vector<16x128xf32>
    %6 = arith.mulf %5, %3 : vector<16x128xf32>
    %7 = arith.addf %4, %6 : vector<16x128xf32>
    %c0_5 = arith.constant 0 : index
    %c0_6 = arith.constant 0 : index
    %8 = vector.load %arg4[%c0_5, %c0_6] : memref<16x128xf32, #tpu.memory_space<vmem>>, vector<16x128xf32>
    tpu.vector_store %arg4[%c0_5, %c0_6], %7 {strides = array<i32>} : memref<16x128xf32, #tpu.memory_space<vmem>>, vector<16x128xf32>,
    return
  }
  func.func @transform_0(%arg0: i32) -> (i32, i32) {
    %c0_i32 = arith.constant 0 : i32
    %c0_i32_0 = arith.constant 0 : i32
    return %arg0, %c0_i32 : i32, i32
  }
  func.func @transform_1(%arg0: i32) -> (i32, i32) {
    %c0_i32 = arith.constant 0 : i32
    %c0_i32_0 = arith.constant 0 : i32
    return %arg0, %c0_i32 : i32, i32
  }
  func.func @transform_2(%arg0: i32) -> (i32, i32) {
    %c0_i32 = arith.constant 0 : i32
    %c0_i32_0 = arith.constant 0 : i32
    return %arg0, %c0_i32 : i32, i32
  }
  func.func @transform_3(%arg0: i32) -> (i32, i32) {
    %c0_i32 = arith.constant 0 : i32
    %c0_i32_0 = arith.constant 0 : i32
    return %arg0, %c0_i32 : i32, i32
  }
}

</mosaic_0001>

<bundles_post_ra>
// kernel: _normal_prior.1
= control target key start
LH: loop header
LB: loop body
LE: loop exit
PB: predicated region body
PF: predicated region fallthrough
CT: control target
= control target key end

     0   :  { %s84_s1 = inlined_call_operand.vmem [shape: f32[16,128], index: 1, kind: input, shape index: {}]   ;;  %s85_s2 = inlined_call_operand.vmem [shape: f32[16,128], index: 2, kind: input, shape index: {}]   ;;  %s86_s0 = inlined_call_operand.vmem [shape: f32[16,128], index: 0, kind: input, shape index: {}]   ;;  %s87_s3 = inlined_call_operand.vmem [shape: f32[16,128], index: 3, kind: output, shape index: {}]  }
   0x1   :  { %v14_v0 = vld [vmem:[%s84_s1] sm:$0xff]  ;;  %v15_v2 = vld [vmem:[%s84_s1 + $0x8] sm:$0xff] }
   0x2   :  { %v16_v1 = vmul.f32 0.5, %v14_v0  ;;  %v17_v3 = vmul.f32 0.5, %v15_v2  ;;  %v24_v6 = vld [vmem:[%s85_s2] sm:$0xff]  ;;  %v25_v7 = vld [vmem:[%s85_s2 + $0x8] sm:$0xff] }
   0x3   :  { %v22_v9 = vld [vmem:[%s86_s0] sm:$0xff]  ;;  %v23_v12 = vld [vmem:[%s86_s0 + $0x8] sm:$0xff] }
   0x4   :  { %v18_v4 = vmul.f32 1.442695, %v16_v1  ;;  %v20_v5 = vmul.f32 1.442695, %v17_v3 }
   0x6   :  { %36 = vpow2.f32 %v18_v4 }
   0x7   :  { %38 = vpow2.f32 %v20_v5 }
  0x13   :  { %v37_v8 = vpop.eup %36 }
  0x14   :  { %v39_v10 = vpop.eup %38  ;;  %v26_v11 = vmul.f32 %v37_v8, %v24_v6 }
  0x15   :  { %v27_v13 = vmul.f32 %v39_v10, %v25_v7 }
  0x16   :  { %v28_v14 = vadd.f32 %v26_v11, %v22_v9 }
  0x17   :  { %v29_v15 = vadd.f32 %v27_v13, %v23_v12 }
  0x18   :  { %30 = vst [vmem:[%s87_s3] sm:$0xff] %v28_v14 }
  0x19   :  { %31 = vst [vmem:[%s87_s3 + $0x8] sm:$0xff] %v29_v15 }

</bundles_post_ra>
